<compile_context>
chip_gen: v6e
topology: v6e:2x2x1
jax: 0.10.0
libtpu: 0.0.40
codegen_flags: <defaults>
</compile_context>

<pallas_src>
import functools
import math

import jax
import jax.numpy as jnp
from jax import lax
from jax.experimental import pallas as pl
from jax.experimental.pallas import tpu as pltpu

LANE = 128
_PER_DIR_BLOCK_CAP = 4 * 1024 * 1024   # ~4 MiB per direction per grid step


def _round_up(v, m):
    return ((v + m - 1) // m) * m


def _vmem_capacity_bytes():
    try:
        info = pltpu.get_tpu_info()
        cap = int(getattr(info, "vmem_capacity_bytes", 0) or 0)
        if cap > 0:
            return cap
    except Exception:
        pass
    return 64 * 1024 * 1024   # conservative: v7x per-TensorCore VMEM


def _lif_kernel(x_ref, o_ref, *, thresh, decay, T, cr, n_chunks, unroll_t):
    # x_ref / o_ref: (T, tr, LANE) views (leading N block dim squeezed out).
    def run_chunk(r0):
        def step(t, mem):
            x_in = x_ref[t, pl.ds(r0, cr), :].astype(jnp.float32)
            mem = mem * decay + x_in
            spike = mem >= thresh                        # fire: (mem - V_th >= 0)
            o_ref[t, pl.ds(r0, cr), :] = spike.astype(o_ref.dtype)
            return jnp.where(spike, 0.0, mem)            # hard reset on spike

        lax.fori_loop(0, T, step, jnp.zeros((cr, LANE), jnp.float32),
                      unroll=unroll_t)

    if n_chunks == 1:
        run_chunk(0)
    else:
        @pl.loop(0, n_chunks)
        def _(c):
            run_chunk(pl.multiple_of(c * cr, cr))


def lif_spike(x, thresh=0.5, tau=0.25, gamma=1.0, *, out_dtype=jnp.float32):
    """Forward pass of LIFSpike.  x: [N, T, *features].

    gamma only affects the ZIF surrogate gradient (backward); forward ignores it.
    out_dtype=float32 matches PyTorch's `.float()`; spikes are exactly 0/1 so
    bfloat16 is a lossless, lower-bandwidth alternative.
    """
    # TODO(synk): custom_vjp with the ZIF surrogate gradient (backward) is not implemented.
    N, T = x.shape[0], x.shape[1]
    rest = x.shape[2:]
    M = math.prod(rest)

    in_item = jnp.dtype(x.dtype).itemsize
    out_item = jnp.dtype(out_dtype).itemsize
    # dtype-correct sublane multiple (f32: 8, bf16: 16, int8/fp8: 32)
    align = max(8 * 4 // in_item, 8 * 4 // out_item, 8)

    xf = x.reshape(N, T, M)                    # free contiguous reshape
    if M % LANE:
        # TODO(synk): non-128-aligned feature tails still cost one pad + one slice HBM pass.
        Mp = _round_up(M, LANE)
        xf = jnp.pad(xf, ((0, 0), (0, 0), (0, Mp - M)))
    else:
        Mp = M
    R = Mp // LANE
    xf = xf.reshape(N, T, R, LANE)             # free

    # --- row-tile (tr) selection: ~4 MiB per direction per block -----------------
    rows_in = max(1, _PER_DIR_BLOCK_CAP // (T * LANE * in_item))
    rows_out = max(1, _PER_DIR_BLOCK_CAP // (T * LANE * out_item))
    max_rows = max(align, min(rows_in, rows_out))
    if R <= max_rows and (R <= 64 or R % align == 0):
        tr = R                                  # full-extent row block
    else:
        m = 64 if max_rows >= 64 else align     # 64 is a multiple of any align here
        tr = max(align, (min(R, max_rows) // m) * m)

    # Keep >= 2 grid steps so both v7x TensorCores get work (when splittable).
    if N * pl.cdiv(R, tr) < 2:
        half = _round_up(pl.cdiv(R, 2), align)
        if half < R:
            tr = half

    # --- in-kernel row chunking: membrane carry stays at <= 8 vregs --------------
    if tr <= 64:
        cr = tr
    else:
        cr = 8
        for d in range(64, 7, -1):
            if tr % d == 0 and d % 8 == 0:
                cr = d
                break
    assert tr % cr == 0
    n_chunks = tr // cr
    unroll_t = int(min(T, 8))

    grid = (N, pl.cdiv(R, tr))

    # --- VMEM budget (generation-aware) -------------------------------------------
    block_bytes = T * tr * LANE * (in_item + out_item)
    vmem_budget = max(16 * 1024 * 1024, int(_vmem_capacity_bytes() * 0.75))
    vmem_limit = int(min(vmem_budget,
                         max(16 * 1024 * 1024, int(2.5 * block_bytes))))

    kernel = functools.partial(
        _lif_kernel, thresh=float(thresh), decay=float(tau), T=T,
        cr=cr, n_chunks=n_chunks, unroll_t=unroll_t)

    out = pl.pallas_call(
        kernel,
        out_shape=jax.ShapeDtypeStruct((N, T, R, LANE), out_dtype),
        grid_spec=pltpu.PrefetchScalarGridSpec(
            num_scalar_prefetch=0,
            grid=grid,
            in_specs=[pl.BlockSpec((pl.Squeezed(), T, tr, LANE),
                                   lambda n, i: (n, 0, i, 0))],
            out_specs=pl.BlockSpec((pl.Squeezed(), T, tr, LANE),
                                   lambda n, i: (n, 0, i, 0)),
        ),
        compiler_params=pltpu.CompilerParams(
            dimension_semantics=("parallel", "parallel"),
            vmem_limit_bytes=vmem_limit),
    )(xf)

    out = out.reshape(N, T, Mp)
    if Mp != M:
        out = out[..., :M]
    return out.reshape((N, T) + rest)


def _lif_ref(x, thresh=0.5, tau=0.25):
    # Pure-JAX reference mirroring the PyTorch loop.
    x = x.astype(jnp.float32)
    T = x.shape[1]
    mem = jnp.zeros_like(x[:, 0])
    spikes = []
    for t in range(T):
        mem = mem * tau + x[:, t]
        spike = (mem - thresh >= 0).astype(jnp.float32)
        mem = mem * (1.0 - spike)
        spikes.append(spike)
    return jnp.stack(spikes, axis=1)


if __name__ == "__main__":
    key = jax.random.PRNGKey(0)
    # [N, T, C, H, W]
    x = jax.random.normal(key, (2, 8, 4, 16, 16), dtype=jnp.float32)

    out = lif_spike(x, thresh=0.5, tau=0.25, gamma=1.0)
    out = jax.block_until_ready(out)

    ref = _lif_ref(x, thresh=0.5, tau=0.25)
    assert out.shape == ref.shape and out.dtype == ref.dtype
    assert jnp.max(jnp.abs(out - ref)) < 1e-6

    print("KERNEL_OK")
</pallas_src>

<mosaic_0001>
module attributes {stable_mosaic.version = 11 : i64} {
  func.func @_lif_kernel(%arg0: i32, %arg1: i32, %arg2: memref<1x8x8x128xf32, #tpu.memory_space<vmem>>, %arg3: memref<1x8x8x128xf32, #tpu.memory_space<vmem>>) attributes {dimension_semantics = [#tpu.dimension_semantics<parallel>, #tpu.dimension_semantics<parallel>], iteration_bounds = array<i64: 2, 1>, scalar_prefetch = 0 : i64, scratch_operands = 0 : i64, tpu.core_type = #tpu.core_type<tc>, window_params = [{transform_indices = @transform_0, window_bounds = array<i64: 1, 8, 8, 128>}, {transform_indices = @transform_1, window_bounds = array<i64: 1, 8, 8, 128>}]} {
    %cst = arith.constant 0.000000e+00 : f32
    %0 = vector.broadcast %cst : f32 to vector<8x128xf32>
    %c0_i32 = arith.constant 0 : i32
    %c0 = arith.constant 0 : index
    %1 = arith.index_cast %c0_i32 : i32 to index
    %c0_0 = arith.constant 0 : index
    %c0_1 = arith.constant 0 : index
    %2 = vector.load %arg2[%c0, %1, %c0_0, %c0_1] : memref<1x8x8x128xf32, #tpu.memory_space<vmem>>, vector<1x1x8x128xf32>
    %3 = vector.shape_cast %2 : vector<1x1x8x128xf32> to vector<8x128xf32>
    %cst_2 = arith.constant 2.500000e-01 : f32
    %4 = vector.broadcast %cst_2 : f32 to vector<8x128xf32>
    %5 = arith.mulf %0, %4 : vector<8x128xf32>
    %6 = arith.addf %5, %3 : vector<8x128xf32>
    %cst_3 = arith.constant 5.000000e-01 : f32
    %7 = vector.broadcast %cst_3 : f32 to vector<8x128xf32>
    %8 = arith.cmpf oge, %6, %7 : vector<8x128xf32>
    %9 = arith.extui %8 : vector<8x128xi1> to vector<8x128xi32>
    %10 = arith.sitofp %9 : vector<8x128xi32> to vector<8x128xf32>
    %c0_4 = arith.constant 0 : index
    %11 = arith.index_cast %c0_i32 : i32 to index
    %c0_5 = arith.constant 0 : index
    %c0_6 = arith.constant 0 : index
    %12 = vector.load %arg3[%c0_4, %11, %c0_5, %c0_6] : memref<1x8x8x128xf32, #tpu.memory_space<vmem>>, vector<1x1x8x128xf32>
    %13 = vector.shape_cast %12 : vector<1x1x8x128xf32> to vector<8x128xf32>
    %14 = vector.shape_cast %10 : vector<8x128xf32> to vector<1x1x8x128xf32>
    tpu.vector_store %arg3[%c0_4, %11, %c0_5, %c0_6], %14 {strides = array<i32>} : memref<1x8x8x128xf32, #tpu.memory_space<vmem>>, vector<1x1x8x128xf32>,
    %cst_7 = arith.constant 0.000000e+00 : f32
    %15 = vector.broadcast %cst_7 : f32 to vector<8x128xf32>
    %16 = arith.select %8, %15, %6 : vector<8x128xi1>, vector<8x128xf32>
    %c1_i32 = arith.constant 1 : i32
    %c0_8 = arith.constant 0 : index
    %17 = arith.index_cast %c1_i32 : i32 to index
    %c0_9 = arith.constant 0 : index
    %c0_10 = arith.constant 0 : index
    %18 = vector.load %arg2[%c0_8, %17, %c0_9, %c0_10] : memref<1x8x8x128xf32, #tpu.memory_space<vmem>>, vector<1x1x8x128xf32>
    %19 = vector.shape_cast %18 : vector<1x1x8x128xf32> to vector<8x128xf32>
    %cst_11 = arith.constant 2.500000e-01 : f32
    %20 = vector.broadcast %cst_11 : f32 to vector<8x128xf32>
    %21 = arith.mulf %16, %20 : vector<8x128xf32>
    %22 = arith.addf %21, %19 : vector<8x128xf32>
    %cst_12 = arith.constant 5.000000e-01 : f32
    %23 = vector.broadcast %cst_12 : f32 to vector<8x128xf32>
    %24 = arith.cmpf oge, %22, %23 : vector<8x128xf32>
    %25 = arith.extui %24 : vector<8x128xi1> to vector<8x128xi32>
    %26 = arith.sitofp %25 : vector<8x128xi32> to vector<8x128xf32>
    %c0_13 = arith.constant 0 : index
    %27 = arith.index_cast %c1_i32 : i32 to index
    %c0_14 = arith.constant 0 : index
    %c0_15 = arith.constant 0 : index
    %28 = vector.load %arg3[%c0_13, %27, %c0_14, %c0_15] : memref<1x8x8x128xf32, #tpu.memory_space<vmem>>, vector<1x1x8x128xf32>
    %29 = vector.shape_cast %28 : vector<1x1x8x128xf32> to vector<8x128xf32>
    %30 = vector.shape_cast %26 : vector<8x128xf32> to vector<1x1x8x128xf32>
    tpu.vector_store %arg3[%c0_13, %27, %c0_14, %c0_15], %30 {strides = array<i32>} : memref<1x8x8x128xf32, #tpu.memory_space<vmem>>, vector<1x1x8x128xf32>,
    %cst_16 = arith.constant 0.000000e+00 : f32
    %31 = vector.broadcast %cst_16 : f32 to vector<8x128xf32>
    %32 = arith.select %24, %31, %22 : vector<8x128xi1>, vector<8x128xf32>
    %c2_i32 = arith.constant 2 : i32
    %c0_17 = arith.constant 0 : index
    %33 = arith.index_cast %c2_i32 : i32 to index
    %c0_18 = arith.constant 0 : index
    %c0_19 = arith.constant 0 : index
    %34 = vector.load %arg2[%c0_17, %33, %c0_18, %c0_19] : memref<1x8x8x128xf32, #tpu.memory_space<vmem>>, vector<1x1x8x128xf32>
    %35 = vector.shape_cast %34 : vector<1x1x8x128xf32> to vector<8x128xf32>
    %cst_20 = arith.constant 2.500000e-01 : f32
    %36 = vector.broadcast %cst_20 : f32 to vector<8x128xf32>
    %37 = arith.mulf %32, %36 : vector<8x128xf32>
    %38 = arith.addf %37, %35 : vector<8x128xf32>
    %cst_21 = arith.constant 5.000000e-01 : f32
    %39 = vector.broadcast %cst_21 : f32 to vector<8x128xf32>
    %40 = arith.cmpf oge, %38, %39 : vector<8x128xf32>
    %41 = arith.extui %40 : vector<8x128xi1> to vector<8x128xi32>
    %42 = arith.sitofp %41 : vector<8x128xi32> to vector<8x128xf32>
    %c0_22 = arith.constant 0 : index
    %43 = arith.index_cast %c2_i32 : i32 to index
    %c0_23 = arith.constant 0 : index
    %c0_24 = arith.constant 0 : index
    %44 = vector.load %arg3[%c0_22, %43, %c0_23, %c0_24] : memref<1x8x8x128xf32, #tpu.memory_space<vmem>>, vector<1x1x8x128xf32>
    %45 = vector.shape_cast %44 : vector<1x1x8x128xf32> to vector<8x128xf32>
    %46 = vector.shape_cast %42 : vector<8x128xf32> to vector<1x1x8x128xf32>
    tpu.vector_store %arg3[%c0_22, %43, %c0_23, %c0_24], %46 {strides = array<i32>} : memref<1x8x8x128xf32, #tpu.memory_space<vmem>>, vector<1x1x8x128xf32>,
    %cst_25 = arith.constant 0.000000e+00 : f32
    %47 = vector.broadcast %cst_25 : f32 to vector<8x128xf32>
    %48 = arith.select %40, %47, %38 : vector<8x128xi1>, vector<8x128xf32>
    %c3_i32 = arith.constant 3 : i32
    %c0_26 = arith.constant 0 : index
    %49 = arith.index_cast %c3_i32 : i32 to index
    %c0_27 = arith.constant 0 : index
    %c0_28 = arith.constant 0 : index
    %50 = vector.load %arg2[%c0_26, %49, %c0_27, %c0_28] : memref<1x8x8x128xf32, #tpu.memory_space<vmem>>, vector<1x1x8x128xf32>
    %51 = vector.shape_cast %50 : vector<1x1x8x128xf32> to vector<8x128xf32>
    %cst_29 = arith.constant 2.500000e-01 : f32
    %52 = vector.broadcast %cst_29 : f32 to vector<8x128xf32>
    %53 = arith.mulf %48, %52 : vector<8x128xf32>
    %54 = arith.addf %53, %51 : vector<8x128xf32>
    %cst_30 = arith.constant 5.000000e-01 : f32
    %55 = vector.broadcast %cst_30 : f32 to vector<8x128xf32>
    %56 = arith.cmpf oge, %54, %55 : vector<8x128xf32>
    %57 = arith.extui %56 : vector<8x128xi1> to vector<8x128xi32>
    %58 = arith.sitofp %57 : vector<8x128xi32> to vector<8x128xf32>
    %c0_31 = arith.constant 0 : index
    %59 = arith.index_cast %c3_i32 : i32 to index
    %c0_32 = arith.constant 0 : index
    %c0_33 = arith.constant 0 : index
    %60 = vector.load %arg3[%c0_31, %59, %c0_32, %c0_33] : memref<1x8x8x128xf32, #tpu.memory_space<vmem>>, vector<1x1x8x128xf32>
    %61 = vector.shape_cast %60 : vector<1x1x8x128xf32> to vector<8x128xf32>
    %62 = vector.shape_cast %58 : vector<8x128xf32> to vector<1x1x8x128xf32>
    tpu.vector_store %arg3[%c0_31, %59, %c0_32, %c0_33], %62 {strides = array<i32>} : memref<1x8x8x128xf32, #tpu.memory_space<vmem>>, vector<1x1x8x128xf32>,
    %cst_34 = arith.constant 0.000000e+00 : f32
    %63 = vector.broadcast %cst_34 : f32 to vector<8x128xf32>
    %64 = arith.select %56, %63, %54 : vector<8x128xi1>, vector<8x128xf32>
    %c4_i32 = arith.constant 4 : i32
    %c0_35 = arith.constant 0 : index
    %65 = arith.index_cast %c4_i32 : i32 to index
    %c0_36 = arith.constant 0 : index
    %c0_37 = arith.constant 0 : index
    %66 = vector.load %arg2[%c0_35, %65, %c0_36, %c0_37] : memref<1x8x8x128xf32, #tpu.memory_space<vmem>>, vector<1x1x8x128xf32>
    %67 = vector.shape_cast %66 : vector<1x1x8x128xf32> to vector<8x128xf32>
    %cst_38 = arith.constant 2.500000e-01 : f32
    %68 = vector.broadcast %cst_38 : f32 to vector<8x128xf32>
    %69 = arith.mulf %64, %68 : vector<8x128xf32>
    %70 = arith.addf %69, %67 : vector<8x128xf32>
    %cst_39 = arith.constant 5.000000e-01 : f32
    %71 = vector.broadcast %cst_39 : f32 to vector<8x128xf32>
    %72 = arith.cmpf oge, %70, %71 : vector<8x128xf32>
    %73 = arith.extui %72 : vector<8x128xi1> to vector<8x128xi32>
    %74 = arith.sitofp %73 : vector<8x128xi32> to vector<8x128xf32>
    %c0_40 = arith.constant 0 : index
    %75 = arith.index_cast %c4_i32 : i32 to index
    %c0_41 = arith.constant 0 : index
    %c0_42 = arith.constant 0 : index
    %76 = vector.load %arg3[%c0_40, %75, %c0_41, %c0_42] : memref<1x8x8x128xf32, #tpu.memory_space<vmem>>, vector<1x1x8x128xf32>
    %77 = vector.shape_cast %76 : vector<1x1x8x128xf32> to vector<8x128xf32>
    %78 = vector.shape_cast %74 : vector<8x128xf32> to vector<1x1x8x128xf32>
    tpu.vector_store %arg3[%c0_40, %75, %c0_41, %c0_42], %78 {strides = array<i32>} : memref<1x8x8x128xf32, #tpu.memory_space<vmem>>, vector<1x1x8x128xf32>,
    %cst_43 = arith.constant 0.000000e+00 : f32
    %79 = vector.broadcast %cst_43 : f32 to vector<8x128xf32>
    %80 = arith.select %72, %79, %70 : vector<8x128xi1>, vector<8x128xf32>
    %c5_i32 = arith.constant 5 : i32
    %c0_44 = arith.constant 0 : index
    %81 = arith.index_cast %c5_i32 : i32 to index
    %c0_45 = arith.constant 0 : index
    %c0_46 = arith.constant 0 : index
    %82 = vector.load %arg2[%c0_44, %81, %c0_45, %c0_46] : memref<1x8x8x128xf32, #tpu.memory_space<vmem>>, vector<1x1x8x128xf32>
    %83 = vector.shape_cast %82 : vector<1x1x8x128xf32> to vector<8x128xf32>
    %cst_47 = arith.constant 2.500000e-01 : f32
    %84 = vector.broadcast %cst_47 : f32 to vector<8x128xf32>
    %85 = arith.mulf %80, %84 : vector<8x128xf32>
    %86 = arith.addf %85, %83 : vector<8x128xf32>
    %cst_48 = arith.constant 5.000000e-01 : f32
    %87 = vector.broadcast %cst_48 : f32 to vector<8x128xf32>
    %88 = arith.cmpf oge, %86, %87 : vector<8x128xf32>
    %89 = arith.extui %88 : vector<8x128xi1> to vector<8x128xi32>
    %90 = arith.sitofp %89 : vector<8x128xi32> to vector<8x128xf32>
    %c0_49 = arith.constant 0 : index
    %91 = arith.index_cast %c5_i32 : i32 to index
    %c0_50 = arith.constant 0 : index
    %c0_51 = arith.constant 0 : index
    %92 = vector.load %arg3[%c0_49, %91, %c0_50, %c0_51] : memref<1x8x8x128xf32, #tpu.memory_space<vmem>>, vector<1x1x8x128xf32>
    %93 = vector.shape_cast %92 : vector<1x1x8x128xf32> to vector<8x128xf32>
    %94 = vector.shape_cast %90 : vector<8x128xf32> to vector<1x1x8x128xf32>
    tpu.vector_store %arg3[%c0_49, %91, %c0_50, %c0_51], %94 {strides = array<i32>} : memref<1x8x8x128xf32, #tpu.memory_space<vmem>>, vector<1x1x8x128xf32>,
    %cst_52 = arith.constant 0.000000e+00 : f32
    %95 = vector.broadcast %cst_52 : f32 to vector<8x128xf32>
    %96 = arith.select %88, %95, %86 : vector<8x128xi1>, vector<8x128xf32>
    %c6_i32 = arith.constant 6 : i32
    %c0_53 = arith.constant 0 : index
    %97 = arith.index_cast %c6_i32 : i32 to index
    %c0_54 = arith.constant 0 : index
    %c0_55 = arith.constant 0 : index
    %98 = vector.load %arg2[%c0_53, %97, %c0_54, %c0_55] : memref<1x8x8x128xf32, #tpu.memory_space<vmem>>, vector<1x1x8x128xf32>
    %99 = vector.shape_cast %98 : vector<1x1x8x128xf32> to vector<8x128xf32>
    %cst_56 = arith.constant 2.500000e-01 : f32
    %100 = vector.broadcast %cst_56 : f32 to vector<8x128xf32>
    %101 = arith.mulf %96, %100 : vector<8x128xf32>
    %102 = arith.addf %101, %99 : vector<8x128xf32>
    %cst_57 = arith.constant 5.000000e-01 : f32
    %103 = vector.broadcast %cst_57 : f32 to vector<8x128xf32>
    %104 = arith.cmpf oge, %102, %103 : vector<8x128xf32>
    %105 = arith.extui %104 : vector<8x128xi1> to vector<8x128xi32>
    %106 = arith.sitofp %105 : vector<8x128xi32> to vector<8x128xf32>
    %c0_58 = arith.constant 0 : index
    %107 = arith.index_cast %c6_i32 : i32 to index
    %c0_59 = arith.constant 0 : index
    %c0_60 = arith.constant 0 : index
    %108 = vector.load %arg3[%c0_58, %107, %c0_59, %c0_60] : memref<1x8x8x128xf32, #tpu.memory_space<vmem>>, vector<1x1x8x128xf32>
    %109 = vector.shape_cast %108 : vector<1x1x8x128xf32> to vector<8x128xf32>
    %110 = vector.shape_cast %106 : vector<8x128xf32> to vector<1x1x8x128xf32>
    tpu.vector_store %arg3[%c0_58, %107, %c0_59, %c0_60], %110 {strides = array<i32>} : memref<1x8x8x128xf32, #tpu.memory_space<vmem>>, vector<1x1x8x128xf32>,
    %cst_61 = arith.constant 0.000000e+00 : f32
    %111 = vector.broadcast %cst_61 : f32 to vector<8x128xf32>
    %112 = arith.select %104, %111, %102 : vector<8x128xi1>, vector<8x128xf32>
    %c7_i32 = arith.constant 7 : i32
    %c0_62 = arith.constant 0 : index
    %113 = arith.index_cast %c7_i32 : i32 to index
    %c0_63 = arith.constant 0 : index
    %c0_64 = arith.constant 0 : index
    %114 = vector.load %arg2[%c0_62, %113, %c0_63, %c0_64] : memref<1x8x8x128xf32, #tpu.memory_space<vmem>>, vector<1x1x8x128xf32>
    %115 = vector.shape_cast %114 : vector<1x1x8x128xf32> to vector<8x128xf32>
    %cst_65 = arith.constant 2.500000e-01 : f32
    %116 = vector.broadcast %cst_65 : f32 to vector<8x128xf32>
    %117 = arith.mulf %112, %116 : vector<8x128xf32>
    %118 = arith.addf %117, %115 : vector<8x128xf32>
    %cst_66 = arith.constant 5.000000e-01 : f32
    %119 = vector.broadcast %cst_66 : f32 to vector<8x128xf32>
    %120 = arith.cmpf oge, %118, %119 : vector<8x128xf32>
    %121 = arith.extui %120 : vector<8x128xi1> to vector<8x128xi32>
    %122 = arith.sitofp %121 : vector<8x128xi32> to vector<8x128xf32>
    %c0_67 = arith.constant 0 : index
    %123 = arith.index_cast %c7_i32 : i32 to index
    %c0_68 = arith.constant 0 : index
    %c0_69 = arith.constant 0 : index
    %124 = vector.load %arg3[%c0_67, %123, %c0_68, %c0_69] : memref<1x8x8x128xf32, #tpu.memory_space<vmem>>, vector<1x1x8x128xf32>
    %125 = vector.shape_cast %124 : vector<1x1x8x128xf32> to vector<8x128xf32>
    %126 = vector.shape_cast %122 : vector<8x128xf32> to vector<1x1x8x128xf32>
    tpu.vector_store %arg3[%c0_67, %123, %c0_68, %c0_69], %126 {strides = array<i32>} : memref<1x8x8x128xf32, #tpu.memory_space<vmem>>, vector<1x1x8x128xf32>,
    %cst_70 = arith.constant 0.000000e+00 : f32
    %127 = vector.broadcast %cst_70 : f32 to vector<8x128xf32>
    %128 = arith.select %120, %127, %118 : vector<8x128xi1>, vector<8x128xf32>
    %c8_i32 = arith.constant 8 : i32
    return
  }
  func.func @transform_0(%arg0: i32, %arg1: i32) -> (i32, i32, i32, i32) {
    %c0_i32 = arith.constant 0 : i32
    %c0_i32_0 = arith.constant 0 : i32
    %c0_i32_1 = arith.constant 0 : i32
    return %arg0, %c0_i32, %arg1, %c0_i32_0 : i32, i32, i32, i32
  }
  func.func @transform_1(%arg0: i32, %arg1: i32) -> (i32, i32, i32, i32) {
    %c0_i32 = arith.constant 0 : i32
    %c0_i32_0 = arith.constant 0 : i32
    %c0_i32_1 = arith.constant 0 : i32
    return %arg0, %c0_i32, %arg1, %c0_i32_0 : i32, i32, i32, i32
  }
}

</mosaic_0001>

<bundles_post_ra>
// kernel: tpu_custom_call.1
= control target key start
LH: loop header
LB: loop body
LE: loop exit
PB: predicated region body
PF: predicated region fallthrough
CT: control target
= control target key end

     0   :  { %6 = vsyncpa [#allocation3], 0  ;;  %s728_s0 = inlined_call_operand.hbm [shape: f32[2,8,8,128], index: 0, kind: input, shape index: {}]   ;;  %s729_s1 = inlined_call_operand.hbm [shape: f32[2,8,8,128], index: 1, kind: output, shape index: {}]  }
   0x1   :  { %8 = vsyncpa [#allocation3 + $0x1], 0 }
   0x2   :  { %9 = vsyncpa [#allocation4], 0 }
   0x3   :  { %11 = vsyncpa [#allocation4 + $0x1], 0  ;;  %s561_s6 = smov 0   ;;  %s563_s7 = smov 0  }
   0x4   :  { %s565_s8 = smov 0   ;;  %s567_s9 = smov 0  }
   0x5   :  { %s569_s10 = smov 0   ;;  %s571_s11 = smov 0  }
   0x6 LB: > { %s328_s12 = sadd.s32 4294967295, %s542_s11   ;;  %s329_s13 = sadd.s32 4294967294, %s542_s11   ;;  %s542_s11 = sphi %s571_s11, %s17_s11   ;;  %s538_s10 = sphi %s569_s10, %s740_s10   ;;  %s534_s9 = sphi %s567_s9, %s739_s9   ;;  %s530_s8 = sphi %s565_s8, %s738_s8   ;;  %s526_s7 = sphi %s563_s7, %s737_s7   ;;  %s522_s6 = sphi %s561_s6, %s736_s6  }
   0x7   : > { %s29_s14 = sadd.s32 1, %s538_s10  ;;  %s38_s15 = sadd.s32 1, %s530_s8 }
   0x8   : > { %p31_p0 = scmp.ge.s32.totalorder %s29_s14, 2  ;;  %p45_p1 = scmp.ne.s32.totalorder %s530_s8, %s526_s7 }
   0x9   : > { %p46_p2 = scmp.eq.s32.totalorder %s542_s11, 0  ;;  %p51_p3 = scmp.ne.s32.totalorder %s526_s7, %s522_s6 }
   0xa   : > { %s742_s14 = smov (%p31_p0, %s29_s14), 0  ;;  %p52_p5 = scmp.eq.s32.totalorder %s328_s12, 0 }
   0xb   : > { %p602_p4 = por %p46_p2, %p45_p1  ;;  %s33_s17 = ssub.s32 %s538_s10, %s742_s14 }
   0xc   : > { %p77_p6 = scmp.eq.s32.totalorder %s328_s12, 1  ;;  %p36_p7 = scmp.eq.s32.totalorder %s33_s17, 0 }
   0xd   : > { %p608_p8 = por %p52_p5, %p51_p3  ;;  %p83_p10 = scmp.eq.s32.totalorder %s329_s13, 1 }
   0xe   : > { %p612_p9 = por %p77_p6, %p45_p1  ;;  %p379_p13 = scmp.lt.s32.totalorder %s542_s11, 2 }
   0xf   : > { %s617_s20 = scalar_select %p36_p7, %s530_s8, %s38_s15  }
  0x10   : > { %p619_p11 = por %p83_p10, %p51_p3  ;;  %s103_s22 = sand.u32 1, %s530_s8  }
  0x11   : > { %s332_s23 = sshll.u32 %s103_s22, 6  ;;  %s365_s24 = sshll.u32 %s538_s10, 10 }
  0x12   : > { %s114_s27 = scalar_lea.hbm %s728_s0, %s365_s24  ;;  %s107_s28 = scalar_lea.vmem [#allocation2], %s332_s23 }
  0x13   : > { %s115_s29 = sshll.u32 %s107_s28, 4  ;;  %p632_p0 = pnand %p379_p13, %p602_p4  ;;  %s116_s29 = int_to_ptr.vmem [resolvable:$true] %s115_s29 }
  0x14   : > { %p335_p1 = scmp.ge.s32.totalorder %s542_s11, 1  ;;  %s104_s2 = scalar_lea.sflag [#allocation3], %s103_s22 }
  0x15   : > { %p436_p2 = pneg %p632_p0  ;;  %s447_s3 = scalar_lea.vmem %s116_s29, 1024 }
  0x16   : > { %p448_p3 = scmp.ne.s32.totalorder %s116_s29, %s447_s3  ;;  %s544_s4 = smov [#allocation2]  }
  0x17   : > { %s452_s5 = sshll.u32 %s544_s4, 4  ;;  %s453_s5 = int_to_ptr.vmem [resolvable:$false] %s452_s5 }
  0x18   : > { %p450_p5 = pnand %p448_p3, %p436_p2  ;;  %s454_s12 = scalar_lea.vmem %s453_s5, 2048 }
  0x19   : > { %p455_p7 = scmp.lt.s32.totalorder %s116_s29, %s453_s5  ;;  %p456_p10 = scmp.lt.s32.totalorder %s454_s12, %s447_s3 }
  0x1a   : > { %p451_p6 = pneg %p450_p5 }
  0x1b   : > { %p457_p12 = por %p456_p10, %p455_p7 }
  0x1d   : > { %p458_p4 = pnand %p457_p12, %p451_p6 }
  0x1f   : > { %461 = shalt.err (!%p458_p4)
}
  0x20   : > { %s545_s13 = smov 128   ;;  %s546_s15 = smov 8  }
  0x21   : > { %374 = dma.hbm_to_vmem [thread:$0]  (!%p632_p0), %s114_s27, 1024, %s116_s29, %s104_s2, %s545_s13, %s545_s13, %s546_s15  }
  0x22   : > { %p123_p13 = scmp.lt.s32.totalorder %s542_s11, 3 }
  0x24   : > { %p124_p2 = pnand %p335_p1, %p123_p13 }
  0x25   : > { %s645_s16 = sand.u32 (!%p124_p2), 1, %s526_s7  }
  0x26   : > { %127 = sbr.rel (%p124_p2) target bundleno = 103 (0x67), region = 24  ;;  %s336_s17 = sshll.u32 (!%p124_p2), %s645_s16, 6 }
  0x27   : > { %s130_s22 = scalar_lea.sflag (!%p124_p2), [#allocation3], %s645_s16  ;;  %s649_s23 = scalar_lea.vmem (!%p124_p2), [#allocation2], %s336_s17 }
  0x2b   : > { %513 = dma.done.wait (%p608_p8), %s130_s22, 1024  }
  0x2c   : > { %515 = vsyncadd (%p608_p8), %s130_s22, 4294966272  ;;  %v152_v0 = vld [vmem:[%s649_s23] sm:$0xff]  ;;  %v547_v1 = vmov 0.0   ;;  %v339_v4 = vld [vmem:[%s649_s23 + $0x8] sm:$0xff]  ;;  %s657_s24 = scalar_lea.vmem [#allocation5], %s336_s17  ;;  %s366_s25 = sshll.u32 %s534_s9, 10 }
  0x2d   : > { %vm154_vm0 = vcmp.ge.f32.partialorder %v152_v0, 0.5  ;;  %v342_v9 = vld [vmem:[%s649_s23 + $0x10] sm:$0xff]  ;;  %v345_v14 = vld [vmem:[%s649_s23 + $0x18] sm:$0xff]  ;;  %v348_v19 = vld [vmem:[%s649_s23 + $0x20] sm:$0xff]  ;;  %s243_s18 = sshll.u32 %s657_s24, 4  ;;  %s679_s28 = scalar_lea.hbm %s729_s1, %s366_s25  ;;  %s674_s18 = int_to_ptr.vmem [resolvable:$true] %s243_s18 }
  0x2e   : > { %v338_v2 = vsel %vm154_vm0, 1.0, %v547_v1  ;;  %v158_v3 = vsel %vm154_vm0, 0.0, %v152_v0  ;;  %v351_v24 = vld [vmem:[%s649_s23 + $0x28] sm:$0xff]  ;;  %v354_v29 = vld [vmem:[%s649_s23 + $0x30] sm:$0xff]  ;;  %v357_v34 = vld [vmem:[%s649_s23 + $0x38] sm:$0xff]  ;;  %s229_s29 = scalar_lea.sflag [#allocation4], %s645_s16 }
  0x2f   : > { %157 = vst [vmem:[%s657_s24] sm:$0xff] %v338_v2  ;;  %v161_v5 = vmul.f32 0.25, %v158_v3  ;;  %s462_s30 = scalar_lea.vmem %s674_s18, 1024  ;;  %s548_s9 = smov [#allocation5]  }
  0x30   : > { %p463_p8 = scmp.ne.s32.totalorder %s674_s18, %s462_s30  ;;  %s466_s2 = sshll.u32 %s548_s9, 4  ;;  %s467_s2 = int_to_ptr.vmem [resolvable:$false] %s466_s2 }
  0x31   : > { %v162_v6 = vadd.f32 %v339_v4, %v161_v5  ;;  %s468_s3 = scalar_lea.vmem %s467_s2, 2048  ;;  %p469_p1 = scmp.lt.s32.totalorder %s674_s18, %s467_s2 }
  0x32   : > { %p464_p12 = pnand %p463_p8, %p612_p9  ;;  %p470_p3 = scmp.lt.s32.totalorder %s468_s3, %s462_s30 }
  0x33   : > { %vm163_vm1 = vcmp.ge.f32.partialorder %v162_v6, 0.5 }
  0x34   : > { %v340_v7 = vsel %vm163_vm1, 1.0, %v547_v1  ;;  %v168_v8 = vsel %vm163_vm1, 0.0, %v162_v6  ;;  %p465_p0 = pneg %p464_p12  ;;  %p471_p5 = por %p470_p3, %p469_p1 }
  0x35   : > { %341 = vst [vmem:[%s657_s24 + $0x8] sm:$0xff] %v340_v7  ;;  %v171_v10 = vmul.f32 0.25, %v168_v8 }
  0x36   : > { %p472_p6 = pnand %p471_p5, %p465_p0 }
  0x37   : > { %v172_v11 = vadd.f32 %v342_v9, %v171_v10 }
  0x39   : > { %vm173_vm2 = vcmp.ge.f32.partialorder %v172_v11, 0.5 }
  0x3a   : > { %v343_v12 = vsel %vm173_vm2, 1.0, %v547_v1  ;;  %v178_v13 = vsel %vm173_vm2, 0.0, %v172_v11 }
  0x3b   : > { %344 = vst [vmem:[%s657_s24 + $0x10] sm:$0xff] %v343_v12  ;;  %v181_v15 = vmul.f32 0.25, %v178_v13 }
  0x3d   : > { %v182_v16 = vadd.f32 %v345_v14, %v181_v15 }
  0x3f   : > { %vm183_vm3 = vcmp.ge.f32.partialorder %v182_v16, 0.5 }
  0x40   : > { %v346_v17 = vsel %vm183_vm3, 1.0, %v547_v1  ;;  %v188_v18 = vsel %vm183_vm3, 0.0, %v182_v16 }
  0x41   : > { %347 = vst [vmem:[%s657_s24 + $0x18] sm:$0xff] %v346_v17  ;;  %v191_v20 = vmul.f32 0.25, %v188_v18 }
  0x43   : > { %v192_v21 = vadd.f32 %v348_v19, %v191_v20 }
  0x45   : > { %vm193_vm4 = vcmp.ge.f32.partialorder %v192_v21, 0.5 }
  0x46   : > { %v349_v22 = vsel %vm193_vm4, 1.0, %v547_v1  ;;  %v198_v23 = vsel %vm193_vm4, 0.0, %v192_v21 }
  0x47   : > { %350 = vst [vmem:[%s657_s24 + $0x20] sm:$0xff] %v349_v22  ;;  %v201_v25 = vmul.f32 0.25, %v198_v23 }
  0x49   : > { %v202_v26 = vadd.f32 %v351_v24, %v201_v25 }
  0x4b   : > { %vm203_vm5 = vcmp.ge.f32.partialorder %v202_v26, 0.5 }
  0x4c   : > { %v352_v27 = vsel %vm203_vm5, 1.0, %v547_v1  ;;  %v208_v28 = vsel %vm203_vm5, 0.0, %v202_v26 }
  0x4d   : > { %353 = vst [vmem:[%s657_s24 + $0x28] sm:$0xff] %v352_v27  ;;  %v211_v30 = vmul.f32 0.25, %v208_v28 }
  0x4f   : > { %v212_v31 = vadd.f32 %v354_v29, %v211_v30 }
  0x51   : > { %vm213_vm6 = vcmp.ge.f32.partialorder %v212_v31, 0.5 }
  0x52   : > { %v355_v32 = vsel %vm213_vm6, 1.0, %v547_v1  ;;  %v218_v33 = vsel %vm213_vm6, 0.0, %v212_v31 }
  0x53   : > { %356 = vst [vmem:[%s657_s24 + $0x30] sm:$0xff] %v355_v32  ;;  %v221_v35 = vmul.f32 0.25, %v218_v33 }
  0x55   : > { %v222_v36 = vadd.f32 %v357_v34, %v221_v35 }
  0x57   : > { %vm223_vm7 = vcmp.ge.f32.partialorder %v222_v36, 0.5 }
  0x58   : > { %v358_v37 = vsel %vm223_vm7, 1.0, %v547_v1 }
  0x59   : > { %359 = vst [vmem:[%s657_s24 + $0x38] sm:$0xff] %v358_v37 }
  0x5a   : > { %475 = shalt.err (!%p472_p6)
}
  0x5b   : > { %s476_s4 = scalar_lea.hbm %s679_s28, 1024  ;;  %s480_s13 = scalar_lea.hbm %s729_s1, 2048 }
  0x5c   : > { %p477_p7 = scmp.ne.s32.totalorder %s679_s28, %s476_s4  ;;  %p481_p13 = scmp.lt.s32.totalorder %s679_s28, %s729_s1 }
  0x5d   : > { %p482_p2 = scmp.lt.s32.totalorder %s480_s13, %s476_s4 }
  0x5e   : > { %p478_p10 = pnand %p477_p7, %p612_p9 }
  0x5f   : > { %p483_p8 = por %p482_p2, %p481_p13 }
  0x60   : > { %p479_p4 = pneg %p478_p10 }
  0x62   : > { %p484_p12 = pnand %p483_p8, %p479_p4 }
  0x64   : > { %487 = shalt.err (!%p484_p12)
}
  0x65   : > { %s549_s22 = smov 128   ;;  %s550_s23 = smov 8  }
  0x66   : > { %369 = dma.vmem_to_hbm [thread:$0]  (%p612_p9), %s674_s18, 1024, %s679_s28, %s229_s29, %s549_s22, %s549_s22, %s550_s23  }
  0x67 PF: > { %s258_s24 = sand.u32 1, %s522_s6   ;;  %p735_p0 = scmp.ge.s32.totalorder %s542_s11, 2 }
  0x68   : > { %s259_s25 = scalar_lea.sflag [#allocation4], %s258_s24 }
  0x69   : > { %p376_p1 = pnand %p735_p0, %p619_p11 }
  0x6b   : > { %p377_p3 = pneg %p376_p1 }
  0x6d   : > { %517 = dma.done.wait (%p377_p3), %s259_s25, 1024  }
  0x6e   : > { %519 = vsyncadd (%p377_p3), %s259_s25, 4294966272  ;;  %s17_s11 = sadd.s32 1, %s542_s11   ;;  %s736_s6 = smov %s526_s7 }
  0x6f   : > { %p14_p5 = scmp.ge.s32.totalorder %s17_s11, 4   ;;  %s737_s7 = smov %s530_s8 }
  0x70   : > { %s738_s8 = smov %s617_s20  ;;  %s739_s9 = smov %s538_s10 }
  0x71   : > { %s740_s10 = smov %s742_s14  ;;  %16 = sbr.rel (!%p14_p5) target bundleno = 6 (0x6), region = 83 }
  0x76   :  { %264 = vsyncpa [#allocation3], 1 }
  0x77   :  { %266 = vsyncpa [#allocation3 + $0x1], 1 }
  0x78   :  { %267 = vsyncpa [#allocation4], 1 }
  0x79   :  { %269 = vsyncpa [#allocation4 + $0x1], 1 }

</bundles_post_ra>
